<compile_context>
chip_gen: v7x
topology: tpu7x:2x2x1
jax: 0.10.0
libtpu: 0.0.40
codegen_flags: <defaults>
</compile_context>

<pallas_src>
import functools

import jax
import jax.numpy as jnp
from jax import lax
from jax.experimental import pallas as pl
from jax.experimental.pallas import tpu as pltpu

# Module hyper-parameters (from the PyTorch source)
EMBEDDING_DIM = 8
HIDDEN_DIM = 10
TARGET_SIZE = 50
VOCAB_SIZE = 27694


def gru_kernel(T, B, embeds_ref, w_i_ref, w_h_ref, bias_ref,
               w_lin_ref, b_lin_ref, labels_ref,
               logits_ref, loss_ref):
    """Fused GRU recurrence + Linear head + per-sample cross-entropy.

    embeds_ref : (T*B, E)  time-major, flattened
    w_i_ref    : (E, 3H)   [W_ir | W_iz | W_in]^T
    w_h_ref    : (H, 3H)   [W_hr | W_hz | W_hn]^T
    bias_ref   : (1, 4H)   [b_ir+b_hr | b_iz+b_hz | b_in | b_hn]
    w_lin_ref  : (H, C)
    b_lin_ref  : (1, C)
    labels_ref : (B, 1) int32
    """
    H = HIDDEN_DIM
    bias_i = bias_ref[:, :3 * H]                 # (1, 3H)  r|z|n input-side biases
    b_hn = bias_ref[:, 3 * H:]                   # (1, H)   hidden n-gate bias

    # Input projection for ALL timesteps in one MXU pass (off the serial chain).
    gi_all = (jnp.dot(embeds_ref[...], w_i_ref[...],
                      preferred_element_type=jnp.float32) + bias_i)   # (T*B, 3H)

    w_h = w_h_ref[...]
    h = jnp.zeros((B, H), jnp.float32)           # PyTorch hidden_init(): zeros

    # T is static -> fully unrolled; h lives in vregs across the recurrence.
    for t in range(T):
        gi = gi_all[t * B:(t + 1) * B, :]                              # (B, 3H)
        gh = jnp.dot(h, w_h, preferred_element_type=jnp.float32)       # (B, 3H)
        rz = jax.nn.sigmoid(gi[:, :2 * H] + gh[:, :2 * H])             # (B, 2H)
        r = rz[:, :H]
        z = rz[:, H:]
        n = jnp.tanh(gi[:, 2 * H:] + r * (gh[:, 2 * H:] + b_hn))
        h = (1.0 - z) * n + z * h

    # Linear head on the last GRU output.
    logits = (jnp.dot(h, w_lin_ref[...], preferred_element_type=jnp.float32)
              + b_lin_ref[...])                                        # (B, C)
    logits_ref[...] = logits

    # Per-sample cross-entropy: lse(logits) - logits[label]
    m = jnp.max(logits, axis=-1, keepdims=True)
    lse = jnp.log(jnp.sum(jnp.exp(logits - m), axis=-1, keepdims=True)) + m
    onehot = (lax.broadcasted_iota(jnp.int32, logits.shape, 1)
              == labels_ref[...]).astype(jnp.float32)
    picked = jnp.sum(onehot * logits, axis=-1, keepdims=True)
    loss_ref[...] = lse - picked


def init_params(key):
    k_emb, k_wih, k_whh, k_bih, k_bhh, k_wl, k_bl = jax.random.split(key, 7)
    bound = 1.0 / jnp.sqrt(HIDDEN_DIM)
    params = {
        "embedding": jax.random.normal(k_emb, (VOCAB_SIZE, EMBEDDING_DIM),
                                       jnp.float32),
        "w_ih": jax.random.uniform(k_wih, (3 * HIDDEN_DIM, EMBEDDING_DIM),
                                   jnp.float32, -bound, bound),
        "w_hh": jax.random.uniform(k_whh, (3 * HIDDEN_DIM, HIDDEN_DIM),
                                   jnp.float32, -bound, bound),
        "b_ih": jax.random.uniform(k_bih, (3 * HIDDEN_DIM,), jnp.float32,
                                   -bound, bound),
        "b_hh": jax.random.uniform(k_bhh, (3 * HIDDEN_DIM,), jnp.float32,
                                   -bound, bound),
        "w_lin": jax.random.uniform(k_wl, (TARGET_SIZE, HIDDEN_DIM),
                                    jnp.float32, -bound, bound),
        "b_lin": jax.random.uniform(k_bl, (TARGET_SIZE,), jnp.float32,
                                    -bound, bound),
    }
    return params


@jax.jit
def gru_forward(sentence, labels, params):
    """sentence: (T, B) int32, labels: (B,) int32 → (spam_space (B,C), loss (B,))."""
    H, C, E = HIDDEN_DIM, TARGET_SIZE, EMBEDDING_DIM

    # Glue: embedding gather + parameter re-layout (trace-time constant folding
    # for the weights; the kernel sees 7 compact VMEM-resident inputs).
    embeds = jnp.take(params["embedding"], sentence, axis=0)   # (T, B, E)
    T, B, _ = embeds.shape
    embeds2d = embeds.reshape(T * B, E)

    w_ih, w_hh = params["w_ih"], params["w_hh"]                # (3H,E), (3H,H) r|z|n blocks
    b_ih, b_hh = params["b_ih"], params["b_hh"]

    w_i_cat = w_ih.T                                           # (E, 3H)
    w_h_cat = w_hh.T                                           # (H, 3H)
    bias_cat = jnp.concatenate(
        [b_ih[:2 * H] + b_hh[:2 * H],    # r,z: input+hidden biases folded
         b_ih[2 * H:],                   # n: input bias
         b_hh[2 * H:]]                   # n: hidden bias (applied inside r * (...))
    ).reshape(1, 4 * H)

    w_lin_t = params["w_lin"].T                                # (H, C)
    b_lin = params["b_lin"].reshape(1, C)
    labels2d = labels.reshape(B, 1).astype(jnp.int32)

    vmem = pl.BlockSpec(memory_space=pltpu.MemorySpace.VMEM)
    logits, loss = pl.pallas_call(
        functools.partial(gru_kernel, T, B),
        out_shape=(jax.ShapeDtypeStruct((B, C), jnp.float32),
                   jax.ShapeDtypeStruct((B, 1), jnp.float32)),
        in_specs=[vmem] * 7,
        out_specs=(vmem, vmem),
    )(embeds2d, w_i_cat, w_h_cat, bias_cat, w_lin_t, b_lin, labels2d)
    return logits, loss[:, 0]


def gru_forward_ref(sentence, labels, params):
    """Pure-JAX reference mirroring PyTorch semantics, for a sanity check."""
    H, C = HIDDEN_DIM, TARGET_SIZE
    embeds = jnp.take(params["embedding"], sentence, axis=0)
    T, B, E = embeds.shape
    w_ih, w_hh = params["w_ih"], params["w_hh"]
    b_ih, b_hh = params["b_ih"], params["b_hh"]

    def step(h, x):
        gi = x @ w_ih.T + b_ih
        gh = h @ w_hh.T + b_hh
        i_r, i_z, i_n = gi[:, :H], gi[:, H:2 * H], gi[:, 2 * H:]
        h_r, h_z, h_n = gh[:, :H], gh[:, H:2 * H], gh[:, 2 * H:]
        r = jax.nn.sigmoid(i_r + h_r)
        z = jax.nn.sigmoid(i_z + h_z)
        n = jnp.tanh(i_n + r * h_n)
        h_new = (1.0 - z) * n + z * h
        return h_new, None

    h0 = jnp.zeros((B, H), jnp.float32)
    h_last, _ = lax.scan(step, h0, embeds)
    logits = h_last @ params["w_lin"].T + params["b_lin"]
    lse = jax.scipy.special.logsumexp(logits, axis=-1)
    picked = jnp.take_along_axis(logits, labels[:, None], axis=-1)[:, 0]
    return logits, lse - picked


if __name__ == "__main__":
    key = jax.random.PRNGKey(0)
    k_params, k_sent, k_lab = jax.random.split(key, 3)

    params = init_params(k_params)

    seq_len, batch = 6, 8
    sentence = jax.random.randint(k_sent, (seq_len, batch), 0, VOCAB_SIZE,
                                  dtype=jnp.int32)
    labels = jax.random.randint(k_lab, (batch,), 0, TARGET_SIZE,
                                dtype=jnp.int32)

    spam_space, pred_label = gru_forward(sentence, labels, params)
    jax.block_until_ready((spam_space, pred_label))

    ref_logits, ref_loss = gru_forward_ref(sentence, labels, params)
    assert spam_space.shape == (batch, TARGET_SIZE)
    assert pred_label.shape == (batch,)
    assert jnp.allclose(spam_space, ref_logits, atol=1e-4, rtol=1e-4)
    assert jnp.allclose(pred_label, ref_loss, atol=1e-4, rtol=1e-4)

    print("KERNEL_OK")
</pallas_src>

<mosaic_0001>
module attributes {stable_mosaic.version = 11 : i64} {
  func.func @gru_kernel(%arg0: memref<48x8xf32, #tpu.memory_space<vmem>>, %arg1: memref<8x30xf32, #tpu.memory_space<vmem>>, %arg2: memref<10x30xf32, #tpu.memory_space<vmem>>, %arg3: memref<1x40xf32, #tpu.memory_space<vmem>>, %arg4: memref<10x50xf32, #tpu.memory_space<vmem>>, %arg5: memref<1x50xf32, #tpu.memory_space<vmem>>, %arg6: memref<8x1xi32, #tpu.memory_space<vmem>>, %arg7: memref<8x50xf32, #tpu.memory_space<vmem>>, %arg8: memref<8x1xf32, #tpu.memory_space<vmem>>) attributes {dimension_semantics = [], scalar_prefetch = 0 : i64, scratch_operands = 0 : i64, tpu.core_type = #tpu.core_type<tc>} {
    %c0 = arith.constant 0 : index
    %c0_0 = arith.constant 0 : index
    %0 = vector.load %arg3[%c0, %c0_0] : memref<1x40xf32, #tpu.memory_space<vmem>>, vector<1x30xf32>
    %c0_1 = arith.constant 0 : index
    %c30 = arith.constant 30 : index
    %1 = vector.load %arg3[%c0_1, %c30] : memref<1x40xf32, #tpu.memory_space<vmem>>, vector<1x10xf32>
    %c0_2 = arith.constant 0 : index
    %c0_3 = arith.constant 0 : index
    %2 = vector.load %arg0[%c0_2, %c0_3] : memref<48x8xf32, #tpu.memory_space<vmem>>, vector<48x8xf32>
    %c0_4 = arith.constant 0 : index
    %c0_5 = arith.constant 0 : index
    %3 = vector.load %arg1[%c0_4, %c0_5] : memref<8x30xf32, #tpu.memory_space<vmem>>, vector<8x30xf32>
    %cst = arith.constant dense<0.000000e+00> : vector<48x30xf32>
    %4 = tpu.matmul %2, %3, %cst {dimension_numbers = #tpu.dot_dimension_numbers<[1], [0], [0], [1], [0, 0, 1, 1], [], []>} : vector<48x8xf32>, vector<8x30xf32>, vector<48x30xf32> -> vector<48x30xf32>
    %5 = vector.broadcast %0 : vector<1x30xf32> to vector<48x30xf32>
    %6 = arith.addf %4, %5 : vector<48x30xf32>
    %c0_6 = arith.constant 0 : index
    %c0_7 = arith.constant 0 : index
    %7 = vector.load %arg2[%c0_6, %c0_7] : memref<10x30xf32, #tpu.memory_space<vmem>>, vector<10x30xf32>
    %cst_8 = arith.constant 0.000000e+00 : f32
    %8 = vector.broadcast %cst_8 : f32 to vector<8x10xf32>
    %9 = vector.extract_strided_slice %6 {offsets = [0, 0], sizes = [8, 30], strides = [1, 1]} : vector<48x30xf32> to vector<8x30xf32>
    %cst_9 = arith.constant dense<0.000000e+00> : vector<8x30xf32>
    %10 = tpu.matmul %8, %7, %cst_9 {dimension_numbers = #tpu.dot_dimension_numbers<[1], [0], [0], [1], [0, 0, 1, 1], [], []>} : vector<8x10xf32>, vector<10x30xf32>, vector<8x30xf32> -> vector<8x30xf32>
    %11 = vector.extract_strided_slice %9 {offsets = [0, 0], sizes = [8, 20], strides = [1, 1]} : vector<8x30xf32> to vector<8x20xf32>
    %12 = vector.extract_strided_slice %10 {offsets = [0, 0], sizes = [8, 20], strides = [1, 1]} : vector<8x30xf32> to vector<8x20xf32>
    %13 = arith.addf %11, %12 : vector<8x20xf32>
    %14 = arith.negf %13 : vector<8x20xf32>
    %15 = math.exp %14 : vector<8x20xf32>
    %cst_10 = arith.constant 1.000000e+00 : f32
    %16 = vector.broadcast %cst_10 : f32 to vector<8x20xf32>
    %17 = arith.addf %16, %15 : vector<8x20xf32>
    %18 = arith.divf %16, %17 : vector<8x20xf32>
    %19 = vector.extract_strided_slice %18 {offsets = [0, 0], sizes = [8, 10], strides = [1, 1]} : vector<8x20xf32> to vector<8x10xf32>
    %20 = vector.extract_strided_slice %18 {offsets = [0, 10], sizes = [8, 10], strides = [1, 1]} : vector<8x20xf32> to vector<8x10xf32>
    %21 = vector.extract_strided_slice %9 {offsets = [0, 20], sizes = [8, 10], strides = [1, 1]} : vector<8x30xf32> to vector<8x10xf32>
    %22 = vector.extract_strided_slice %10 {offsets = [0, 20], sizes = [8, 10], strides = [1, 1]} : vector<8x30xf32> to vector<8x10xf32>
    %23 = vector.broadcast %1 : vector<1x10xf32> to vector<8x10xf32>
    %24 = arith.addf %22, %23 : vector<8x10xf32>
    %25 = arith.mulf %19, %24 : vector<8x10xf32>
    %26 = arith.addf %21, %25 : vector<8x10xf32>
    %27 = math.tanh %26 : vector<8x10xf32>
    %cst_11 = arith.constant 1.000000e+00 : f32
    %28 = vector.broadcast %cst_11 : f32 to vector<8x10xf32>
    %29 = arith.subf %28, %20 : vector<8x10xf32>
    %30 = arith.mulf %29, %27 : vector<8x10xf32>
    %31 = arith.mulf %20, %8 : vector<8x10xf32>
    %32 = arith.addf %30, %31 : vector<8x10xf32>
    %33 = vector.extract_strided_slice %6 {offsets = [8, 0], sizes = [8, 30], strides = [1, 1]} : vector<48x30xf32> to vector<8x30xf32>
    %cst_12 = arith.constant dense<0.000000e+00> : vector<8x30xf32>
    %34 = tpu.matmul %32, %7, %cst_12 {dimension_numbers = #tpu.dot_dimension_numbers<[1], [0], [0], [1], [0, 0, 1, 1], [], []>} : vector<8x10xf32>, vector<10x30xf32>, vector<8x30xf32> -> vector<8x30xf32>
    %35 = vector.extract_strided_slice %33 {offsets = [0, 0], sizes = [8, 20], strides = [1, 1]} : vector<8x30xf32> to vector<8x20xf32>
    %36 = vector.extract_strided_slice %34 {offsets = [0, 0], sizes = [8, 20], strides = [1, 1]} : vector<8x30xf32> to vector<8x20xf32>
    %37 = arith.addf %35, %36 : vector<8x20xf32>
    %38 = arith.negf %37 : vector<8x20xf32>
    %39 = math.exp %38 : vector<8x20xf32>
    %cst_13 = arith.constant 1.000000e+00 : f32
    %40 = vector.broadcast %cst_13 : f32 to vector<8x20xf32>
    %41 = arith.addf %40, %39 : vector<8x20xf32>
    %42 = arith.divf %40, %41 : vector<8x20xf32>
    %43 = vector.extract_strided_slice %42 {offsets = [0, 0], sizes = [8, 10], strides = [1, 1]} : vector<8x20xf32> to vector<8x10xf32>
    %44 = vector.extract_strided_slice %42 {offsets = [0, 10], sizes = [8, 10], strides = [1, 1]} : vector<8x20xf32> to vector<8x10xf32>
    %45 = vector.extract_strided_slice %33 {offsets = [0, 20], sizes = [8, 10], strides = [1, 1]} : vector<8x30xf32> to vector<8x10xf32>
    %46 = vector.extract_strided_slice %34 {offsets = [0, 20], sizes = [8, 10], strides = [1, 1]} : vector<8x30xf32> to vector<8x10xf32>
    %47 = vector.broadcast %1 : vector<1x10xf32> to vector<8x10xf32>
    %48 = arith.addf %46, %47 : vector<8x10xf32>
    %49 = arith.mulf %43, %48 : vector<8x10xf32>
    %50 = arith.addf %45, %49 : vector<8x10xf32>
    %51 = math.tanh %50 : vector<8x10xf32>
    %cst_14 = arith.constant 1.000000e+00 : f32
    %52 = vector.broadcast %cst_14 : f32 to vector<8x10xf32>
    %53 = arith.subf %52, %44 : vector<8x10xf32>
    %54 = arith.mulf %53, %51 : vector<8x10xf32>
    %55 = arith.mulf %44, %32 : vector<8x10xf32>
    %56 = arith.addf %54, %55 : vector<8x10xf32>
    %57 = vector.extract_strided_slice %6 {offsets = [16, 0], sizes = [8, 30], strides = [1, 1]} : vector<48x30xf32> to vector<8x30xf32>
    %cst_15 = arith.constant dense<0.000000e+00> : vector<8x30xf32>
    %58 = tpu.matmul %56, %7, %cst_15 {dimension_numbers = #tpu.dot_dimension_numbers<[1], [0], [0], [1], [0, 0, 1, 1], [], []>} : vector<8x10xf32>, vector<10x30xf32>, vector<8x30xf32> -> vector<8x30xf32>
    %59 = vector.extract_strided_slice %57 {offsets = [0, 0], sizes = [8, 20], strides = [1, 1]} : vector<8x30xf32> to vector<8x20xf32>
    %60 = vector.extract_strided_slice %58 {offsets = [0, 0], sizes = [8, 20], strides = [1, 1]} : vector<8x30xf32> to vector<8x20xf32>
    %61 = arith.addf %59, %60 : vector<8x20xf32>
    %62 = arith.negf %61 : vector<8x20xf32>
    %63 = math.exp %62 : vector<8x20xf32>
    %cst_16 = arith.constant 1.000000e+00 : f32
    %64 = vector.broadcast %cst_16 : f32 to vector<8x20xf32>
    %65 = arith.addf %64, %63 : vector<8x20xf32>
    %66 = arith.divf %64, %65 : vector<8x20xf32>
    %67 = vector.extract_strided_slice %66 {offsets = [0, 0], sizes = [8, 10], strides = [1, 1]} : vector<8x20xf32> to vector<8x10xf32>
    %68 = vector.extract_strided_slice %66 {offsets = [0, 10], sizes = [8, 10], strides = [1, 1]} : vector<8x20xf32> to vector<8x10xf32>
    %69 = vector.extract_strided_slice %57 {offsets = [0, 20], sizes = [8, 10], strides = [1, 1]} : vector<8x30xf32> to vector<8x10xf32>
    %70 = vector.extract_strided_slice %58 {offsets = [0, 20], sizes = [8, 10], strides = [1, 1]} : vector<8x30xf32> to vector<8x10xf32>
    %71 = vector.broadcast %1 : vector<1x10xf32> to vector<8x10xf32>
    %72 = arith.addf %70, %71 : vector<8x10xf32>
    %73 = arith.mulf %67, %72 : vector<8x10xf32>
    %74 = arith.addf %69, %73 : vector<8x10xf32>
    %75 = math.tanh %74 : vector<8x10xf32>
    %cst_17 = arith.constant 1.000000e+00 : f32
    %76 = vector.broadcast %cst_17 : f32 to vector<8x10xf32>
    %77 = arith.subf %76, %68 : vector<8x10xf32>
    %78 = arith.mulf %77, %75 : vector<8x10xf32>
    %79 = arith.mulf %68, %56 : vector<8x10xf32>
    %80 = arith.addf %78, %79 : vector<8x10xf32>
    %81 = vector.extract_strided_slice %6 {offsets = [24, 0], sizes = [8, 30], strides = [1, 1]} : vector<48x30xf32> to vector<8x30xf32>
    %cst_18 = arith.constant dense<0.000000e+00> : vector<8x30xf32>
    %82 = tpu.matmul %80, %7, %cst_18 {dimension_numbers = #tpu.dot_dimension_numbers<[1], [0], [0], [1], [0, 0, 1, 1], [], []>} : vector<8x10xf32>, vector<10x30xf32>, vector<8x30xf32> -> vector<8x30xf32>
    %83 = vector.extract_strided_slice %81 {offsets = [0, 0], sizes = [8, 20], strides = [1, 1]} : vector<8x30xf32> to vector<8x20xf32>
    %84 = vector.extract_strided_slice %82 {offsets = [0, 0], sizes = [8, 20], strides = [1, 1]} : vector<8x30xf32> to vector<8x20xf32>
    %85 = arith.addf %83, %84 : vector<8x20xf32>
    %86 = arith.negf %85 : vector<8x20xf32>
    %87 = math.exp %86 : vector<8x20xf32>
    %cst_19 = arith.constant 1.000000e+00 : f32
    %88 = vector.broadcast %cst_19 : f32 to vector<8x20xf32>
    %89 = arith.addf %88, %87 : vector<8x20xf32>
    %90 = arith.divf %88, %89 : vector<8x20xf32>
    %91 = vector.extract_strided_slice %90 {offsets = [0, 0], sizes = [8, 10], strides = [1, 1]} : vector<8x20xf32> to vector<8x10xf32>
    %92 = vector.extract_strided_slice %90 {offsets = [0, 10], sizes = [8, 10], strides = [1, 1]} : vector<8x20xf32> to vector<8x10xf32>
    %93 = vector.extract_strided_slice %81 {offsets = [0, 20], sizes = [8, 10], strides = [1, 1]} : vector<8x30xf32> to vector<8x10xf32>
    %94 = vector.extract_strided_slice %82 {offsets = [0, 20], sizes = [8, 10], strides = [1, 1]} : vector<8x30xf32> to vector<8x10xf32>
    %95 = vector.broadcast %1 : vector<1x10xf32> to vector<8x10xf32>
    %96 = arith.addf %94, %95 : vector<8x10xf32>
    %97 = arith.mulf %91, %96 : vector<8x10xf32>
    %98 = arith.addf %93, %97 : vector<8x10xf32>
    %99 = math.tanh %98 : vector<8x10xf32>
    %cst_20 = arith.constant 1.000000e+00 : f32
    %100 = vector.broadcast %cst_20 : f32 to vector<8x10xf32>
    %101 = arith.subf %100, %92 : vector<8x10xf32>
    %102 = arith.mulf %101, %99 : vector<8x10xf32>
    %103 = arith.mulf %92, %80 : vector<8x10xf32>
    %104 = arith.addf %102, %103 : vector<8x10xf32>
    %105 = vector.extract_strided_slice %6 {offsets = [32, 0], sizes = [8, 30], strides = [1, 1]} : vector<48x30xf32> to vector<8x30xf32>
    %cst_21 = arith.constant dense<0.000000e+00> : vector<8x30xf32>
    %106 = tpu.matmul %104, %7, %cst_21 {dimension_numbers = #tpu.dot_dimension_numbers<[1], [0], [0], [1], [0, 0, 1, 1], [], []>} : vector<8x10xf32>, vector<10x30xf32>, vector<8x30xf32> -> vector<8x30xf32>
    %107 = vector.extract_strided_slice %105 {offsets = [0, 0], sizes = [8, 20], strides = [1, 1]} : vector<8x30xf32> to vector<8x20xf32>
    %108 = vector.extract_strided_slice %106 {offsets = [0, 0], sizes = [8, 20], strides = [1, 1]} : vector<8x30xf32> to vector<8x20xf32>
    %109 = arith.addf %107, %108 : vector<8x20xf32>
    %110 = arith.negf %109 : vector<8x20xf32>
    %111 = math.exp %110 : vector<8x20xf32>
    %cst_22 = arith.constant 1.000000e+00 : f32
    %112 = vector.broadcast %cst_22 : f32 to vector<8x20xf32>
    %113 = arith.addf %112, %111 : vector<8x20xf32>
    %114 = arith.divf %112, %113 : vector<8x20xf32>
    %115 = vector.extract_strided_slice %114 {offsets = [0, 0], sizes = [8, 10], strides = [1, 1]} : vector<8x20xf32> to vector<8x10xf32>
    %116 = vector.extract_strided_slice %114 {offsets = [0, 10], sizes = [8, 10], strides = [1, 1]} : vector<8x20xf32> to vector<8x10xf32>
    %117 = vector.extract_strided_slice %105 {offsets = [0, 20], sizes = [8, 10], strides = [1, 1]} : vector<8x30xf32> to vector<8x10xf32>
    %118 = vector.extract_strided_slice %106 {offsets = [0, 20], sizes = [8, 10], strides = [1, 1]} : vector<8x30xf32> to vector<8x10xf32>
    %119 = vector.broadcast %1 : vector<1x10xf32> to vector<8x10xf32>
    %120 = arith.addf %118, %119 : vector<8x10xf32>
    %121 = arith.mulf %115, %120 : vector<8x10xf32>
    %122 = arith.addf %117, %121 : vector<8x10xf32>
    %123 = math.tanh %122 : vector<8x10xf32>
    %cst_23 = arith.constant 1.000000e+00 : f32
    %124 = vector.broadcast %cst_23 : f32 to vector<8x10xf32>
    %125 = arith.subf %124, %116 : vector<8x10xf32>
    %126 = arith.mulf %125, %123 : vector<8x10xf32>
    %127 = arith.mulf %116, %104 : vector<8x10xf32>
    %128 = arith.addf %126, %127 : vector<8x10xf32>
    %129 = vector.extract_strided_slice %6 {offsets = [40, 0], sizes = [8, 30], strides = [1, 1]} : vector<48x30xf32> to vector<8x30xf32>
    %cst_24 = arith.constant dense<0.000000e+00> : vector<8x30xf32>
    %130 = tpu.matmul %128, %7, %cst_24 {dimension_numbers = #tpu.dot_dimension_numbers<[1], [0], [0], [1], [0, 0, 1, 1], [], []>} : vector<8x10xf32>, vector<10x30xf32>, vector<8x30xf32> -> vector<8x30xf32>
    %131 = vector.extract_strided_slice %129 {offsets = [0, 0], sizes = [8, 20], strides = [1, 1]} : vector<8x30xf32> to vector<8x20xf32>
    %132 = vector.extract_strided_slice %130 {offsets = [0, 0], sizes = [8, 20], strides = [1, 1]} : vector<8x30xf32> to vector<8x20xf32>
    %133 = arith.addf %131, %132 : vector<8x20xf32>
    %134 = arith.negf %133 : vector<8x20xf32>
    %135 = math.exp %134 : vector<8x20xf32>
    %cst_25 = arith.constant 1.000000e+00 : f32
    %136 = vector.broadcast %cst_25 : f32 to vector<8x20xf32>
    %137 = arith.addf %136, %135 : vector<8x20xf32>
    %138 = arith.divf %136, %137 : vector<8x20xf32>
    %139 = vector.extract_strided_slice %138 {offsets = [0, 0], sizes = [8, 10], strides = [1, 1]} : vector<8x20xf32> to vector<8x10xf32>
    %140 = vector.extract_strided_slice %138 {offsets = [0, 10], sizes = [8, 10], strides = [1, 1]} : vector<8x20xf32> to vector<8x10xf32>
    %141 = vector.extract_strided_slice %129 {offsets = [0, 20], sizes = [8, 10], strides = [1, 1]} : vector<8x30xf32> to vector<8x10xf32>
    %142 = vector.extract_strided_slice %130 {offsets = [0, 20], sizes = [8, 10], strides = [1, 1]} : vector<8x30xf32> to vector<8x10xf32>
    %143 = vector.broadcast %1 : vector<1x10xf32> to vector<8x10xf32>
    %144 = arith.addf %142, %143 : vector<8x10xf32>
    %145 = arith.mulf %139, %144 : vector<8x10xf32>
    %146 = arith.addf %141, %145 : vector<8x10xf32>
    %147 = math.tanh %146 : vector<8x10xf32>
    %cst_26 = arith.constant 1.000000e+00 : f32
    %148 = vector.broadcast %cst_26 : f32 to vector<8x10xf32>
    %149 = arith.subf %148, %140 : vector<8x10xf32>
    %150 = arith.mulf %149, %147 : vector<8x10xf32>
    %151 = arith.mulf %140, %128 : vector<8x10xf32>
    %152 = arith.addf %150, %151 : vector<8x10xf32>
    %c0_27 = arith.constant 0 : index
    %c0_28 = arith.constant 0 : index
    %153 = vector.load %arg4[%c0_27, %c0_28] : memref<10x50xf32, #tpu.memory_space<vmem>>, vector<10x50xf32>
    %cst_29 = arith.constant dense<0.000000e+00> : vector<8x50xf32>
    %154 = tpu.matmul %152, %153, %cst_29 {dimension_numbers = #tpu.dot_dimension_numbers<[1], [0], [0], [1], [0, 0, 1, 1], [], []>} : vector<8x10xf32>, vector<10x50xf32>, vector<8x50xf32> -> vector<8x50xf32>
    %c0_30 = arith.constant 0 : index
    %c0_31 = arith.constant 0 : index
    %155 = vector.load %arg5[%c0_30, %c0_31] : memref<1x50xf32, #tpu.memory_space<vmem>>, vector<1x50xf32>
    %156 = vector.broadcast %155 : vector<1x50xf32> to vector<8x50xf32>
    %157 = arith.addf %154, %156 : vector<8x50xf32>
    %c0_32 = arith.constant 0 : index
    %c0_33 = arith.constant 0 : index
    %158 = vector.load %arg7[%c0_32, %c0_33] : memref<8x50xf32, #tpu.memory_space<vmem>>, vector<8x50xf32>
    tpu.vector_store %arg7[%c0_32, %c0_33], %157 {strides = array<i32>} : memref<8x50xf32, #tpu.memory_space<vmem>>, vector<8x50xf32>,
    %cst_34 = arith.constant dense<0xFF800000> : vector<8xf32>
    %159 = vector.multi_reduction <maximumf>, %157, %cst_34 [1] : vector<8x50xf32> to vector<8xf32>
    %160 = vector.shape_cast %159 : vector<8xf32> to vector<8x1xf32>
    %161 = vector.broadcast %160 : vector<8x1xf32> to vector<8x50xf32>
    %162 = arith.subf %157, %161 : vector<8x50xf32>
    %163 = math.exp %162 : vector<8x50xf32>
    %cst_35 = arith.constant dense<0.000000e+00> : vector<8xf32>
    %164 = vector.multi_reduction <add>, %163, %cst_35 [1] : vector<8x50xf32> to vector<8xf32>
    %165 = vector.shape_cast %164 : vector<8xf32> to vector<8x1xf32>
    %166 = math.log %165 : vector<8x1xf32>
    %167 = arith.addf %166, %160 : vector<8x1xf32>
    %168 = tpu.iota {dimensions = array<i32: 1>} : vector<8x50xi32>
    %c0_36 = arith.constant 0 : index
    %c0_37 = arith.constant 0 : index
    %169 = vector.load %arg6[%c0_36, %c0_37] : memref<8x1xi32, #tpu.memory_space<vmem>>, vector<8x1xi32>
    %170 = vector.broadcast %169 : vector<8x1xi32> to vector<8x50xi32>
    %171 = arith.cmpi eq, %168, %170 : vector<8x50xi32>
    %172 = arith.extui %171 : vector<8x50xi1> to vector<8x50xi32>
    %173 = arith.sitofp %172 : vector<8x50xi32> to vector<8x50xf32>
    %174 = arith.mulf %173, %157 : vector<8x50xf32>
    %cst_38 = arith.constant dense<0.000000e+00> : vector<8xf32>
    %175 = vector.multi_reduction <add>, %174, %cst_38 [1] : vector<8x50xf32> to vector<8xf32>
    %176 = vector.shape_cast %175 : vector<8xf32> to vector<8x1xf32>
    %177 = arith.subf %167, %176 : vector<8x1xf32>
    %c0_39 = arith.constant 0 : index
    %c0_40 = arith.constant 0 : index
    %178 = vector.load %arg8[%c0_39, %c0_40] : memref<8x1xf32, #tpu.memory_space<vmem>>, vector<8x1xf32>
    tpu.vector_store %arg8[%c0_39, %c0_40], %177 {strides = array<i32>} : memref<8x1xf32, #tpu.memory_space<vmem>>, vector<8x1xf32>,
    return
  }
}

</mosaic_0001>

<bundles_post_ra>
// kernel: gru_forward.1
= control target key start
LH: loop header
LB: loop body
LE: loop exit
PB: predicated region body
PF: predicated region fallthrough
CT: control target
= control target key end

     0   :  { %vm43_vm0 = vcmask 64512   ;;  %vm163_vm1 = vcmask 1041408   ;;  %v1130_v5 = vmov 0.0|0.0   ;;  %vm1131_vm2 = vmmov 1   ;;  %s1347_s0 = inlined_call_operand.vmem [shape: f32[48,8], index: 0, kind: input, shape index: {}]   ;;  %s1348_s1 = inlined_call_operand.vmem [shape: f32[8,30], index: 1, kind: input, shape index: {}]   ;;  %s1349_s2 = inlined_call_operand.vmem [shape: f32[10,30], index: 2, kind: input, shape index: {}]   ;;  %s1350_s3 = inlined_call_operand.vmem [shape: f32[1,40], index: 3, kind: input, shape index: {}]   ;;  %s1351_s4 = inlined_call_operand.vmem [shape: f32[10,50], index: 4, kind: input, shape index: {}]   ;;  %s1352_s5 = inlined_call_operand.vmem [shape: f32[1,50], index: 5, kind: input, shape index: {}]   ;;  %s1353_s6 = inlined_call_operand.vmem [shape: s32[8,1], index: 6, kind: input, shape index: {}]   ;;  %s1354_s7 = inlined_call_operand.hbm [shape: f32[8,50], index: 7, kind: output, shape index: {0}]   ;;  %s1355_s8 = inlined_call_operand.vmem [shape: f32[8,1], index: 8, kind: output, shape index: {1}]  }
   0x1   :  { %v36_v0 = vld [vmem:[%s1348_s1] sm:$0xff]  ;;  %v31_v2 = vld [vmem:[%s1347_s0 + $0x8] sm:$0xff]  ;;  %1028 = vmatprep.subr.bf16.mxu1 %v1130_v5  ;;  %vm1203_vm3 = vmpackc.low %vm163_vm1, %vm1131_vm2  ;;  %vm1132_vm4 = vmmov 0   ;;  %v1133_v9 = vmov 0.0  }
   0x2   :  { %v30_v1 = vld [vmem:[%s1347_s0] sm:$0xff]  ;;  %968 = vmatprep.subr.mxu0 %v36_v0  ;;  %v158_v4 = vld [vmem:[%s1349_s2 + $0x8] sm:$0x3]  ;;  %983 = vmatprep.mubr.msk.f32.mxu1 %vm1132_vm4, %v1133_v9 }
   0x3   :  { %970 = vmatprep.mubr.msk.f32.mxu0 %vm43_vm0, %v30_v1  ;;  %v157_v3 = vld [vmem:[%s1349_s2] sm:$0xff]  ;;  %969 = vmatpush3.msra.mxu0 %v36_v0 }
   0x4   :  { %v1201_v6 = vpack.c.bf16 %v158_v4, %v157_v3  ;;  %v1210_v8 = vld [vmem:[%s1350_s3] ss:$0 sm:$0xff]  ;;  %971 = vmatmul.mubr.msk.f32.vlgmr.msra.gmra.mrb[0].mxu0 %vm43_vm0, %v31_v2 }
   0x5   :  { %14 = vsyncpa [#allocation3], 0  ;;  %s1134_s2 = smov 118   ;;  %1040 = vmatprep.subr.bf16.mxu0 %v1130_v5  ;;  %s1135_s3 = smov 108   ;;  %vm159_vm5 = vcmask 80896   ;;  %v32_v46 = vld [vmem:[%s1347_s0 + $0x10] sm:$0xff]  ;;  %v878_v7 = vlaneseq }
   0x6   :  { %1031 = vmatpush3.bf16.msk.msra.mxu1 %vm1203_vm3, %v1201_v6  ;;  %244 = vrot.lane.b32.xlu0 %v1210_v8, %s1134_s2  ;;  %s1136_s16 = smov 20   ;;  %v33_v47 = vld [vmem:[%s1347_s0 + $0x18] sm:$0xff]  ;;  %vm864_vm7 = vcmask 408576  }
   0x7   :  { %1032 = vmatprep.subr.bf16.mxu1 %v1130_v5  ;;  %1043 = vmatpush3.bf16.msk.msra.mxu0 %vm1203_vm3, %v1201_v6 }
   0x8   :  { %1048 = vmatprep.subr.bf16.mxu0 %v1130_v5  ;;  %973 = vmatprep.mubr.msk.f32.mxu0 %vm43_vm0, %v32_v46 }
   0x9   :  { %984 = vmatmul.mubr.f32.vlgmr.msra.gmra.mrb[0].mxu1 %v1133_v9  ;;  %974 = vmatmul.mubr.msk.f32.gmra.mrb[2].mxu0 %vm43_vm0, %v33_v47 }
   0xa   :  { %1035 = vmatpush3.bf16.msk.msra.mxu1 %vm1203_vm3, %v1201_v6  ;;  %990 = vmatprep.mubr.msk.f32.mxu1 %vm1132_vm4, %v1133_v9 }
   0xb   :  { %1036 = vmatprep.subr.bf16.mxu1 %v1130_v5 }
  0x78   :  { %v1233_v12 = vpop.permute.xlu0 %244 }
  0xd7   :  { %v972_v10 = vpop.f32.mrb[0].mxu0 }
  0xd8   :  { %v128_v11 = vpop.f32.mrb[1].mxu0  ;;  %v134_v36 = vadd.f32 %v972_v10, %v1210_v8  ;;  %v34_v10 = vld [vmem:[%s1347_s0 + $0x20] sm:$0xff] }
  0xd9   :  { %v129_v16 = vadd.f32 %v1210_v8, %v128_v11  ;;  %v35_v11 = vld [vmem:[%s1347_s0 + $0x28] sm:$0xff]  ;;  %976 = vmatprep.mubr.msk.f32.mxu0 %vm43_vm0, %v34_v10 }
  0xda   :  { %977 = vmatmul.mubr.msk.f32.gmra.mrb[4].mxu0 %vm43_vm0, %v35_v11 }
  0xdb   :  { %1004 = vmatprep.mubr.msk.f32.mxu0 %vm1132_vm4, %v1133_v9 }
  0xdc   :  { %v233_v13 = vpop.f32.mrb[0].mxu1  ;;  %v975_v54 = vpop.f32.mrb[2].mxu0 }
  0xdd   :  { %v985_v14 = vpop.f32.mrb[1].mxu1  ;;  %v247_v15 = vadd.f32 %v1233_v12, %v233_v13  ;;  %v237_v17 = vadd.f32 %v233_v13, %v129_v16  ;;  %v138_v55 = vpop.f32.mrb[3].mxu0 }
  0xde   :  { %v139_v60 = vadd.f32 %v1210_v8, %v138_v55 }
  0xdf   :  { %249 = vrot.lane.b32.xlu0 %v247_v15, %s1135_s3  ;;  %v920_v18 = vmul.f32 -1.442695, %v237_v17 }
  0xe1   :  { %1066 = vpow2.f32 %v920_v18 }
  0xeb   :  { %v1067_v19 = vpop.eup %1066 }
  0xec   :  { %v241_v20 = vadd.f32 1.0, %v1067_v19 }
  0xee   :  { %1068 = vrcp.f32 %v241_v20 }
  0xf8   :  { %v1069_v21 = vpop.eup %1068 }
  0xf9   :  { %v259_v27 = vsub.f32 1.0, %v1069_v21  ;;  %v265_v29 = vmul.f32 0.0, %v1069_v21 }
 0x151   :  { %v250_v22 = vpop.permute.xlu0 %249 }
 0x152   :  { %v252_v23 = vmul.f32 %v1069_v21, %v250_v22 }
 0x154   :  { %254 = vrot.lane.b32.xlu1 %v252_v23, %s1136_s16 }
 0x1ad   :  { %v1285_v19 = vpop.f32.mrb[4].mxu0 }
 0x1ae   :  { %v148_v20 = vpop.f32.mrb[5].mxu0 }
 0x1c6   :  { %v255_v24 = vpop.permute.xlu1 %254 }
 0x1c7   :  { %v257_v25 = vadd.f32 %v255_v24, %v129_v16 }
 0x1c9   :  { %1070 = vtanh.f32 %v257_v25  ;;  %v144_v25 = vadd.f32 %v975_v54, %v1210_v8 }
 0x1d3   :  { %v1071_v26 = vpop.eup %1070 }
 0x1d4   :  { %261 = vrot.lane.b32.xlu1 %v1071_v26, %s1134_s2 }
 0x246   :  { %v262_v28 = vpop.permute.xlu1 %261 }
 0x247   :  { %v264_v30 = vmul.f32 %v262_v28, %v259_v27 }
 0x249   :  { %v266_v31 = vadd.f32 %v265_v29, %v264_v30 }
 0x24b   :  { %268 = vrot.lane.b32.xlu0 %v266_v31, %s1134_s2 }
 0x2bd   :  { %v269_v32 = vpop.permute.xlu0 %268 }
 0x2be   :  { %991 = vmatmul.mubr.msk.f32.vlgmr.msra.gmra.mrb[2].mxu1 %vm159_vm5, %v269_v32 }
 0x2bf   :  { %1039 = vmatpush3.bf16.msk.msra.mxu1 %vm1203_vm3, %v1201_v6  ;;  %997 = vmatprep.mubr.msk.f32.mxu1 %vm1132_vm4, %v1133_v9 }
 0x2c0   :  { %1044 = vmatprep.subr.bf16.mxu1 %v1130_v5 }
 0x391   :  { %v338_v33 = vpop.f32.mrb[2].mxu1 }
 0x392   :  { %v349_v34 = vadd.f32 %v338_v33, %v1233_v12  ;;  %v992_v35 = vpop.f32.mrb[3].mxu1  ;;  %v342_v37 = vadd.f32 %v338_v33, %v134_v36 }
 0x394   :  { %351 = vrot.lane.b32.xlu1 %v349_v34, %s1135_s3  ;;  %v923_v38 = vmul.f32 -1.442695, %v342_v37 }
 0x396   :  { %1072 = vpow2.f32 %v923_v38 }
 0x3a0   :  { %v1073_v39 = vpop.eup %1072 }
 0x3a1   :  { %v346_v40 = vadd.f32 1.0, %v1073_v39 }
 0x3a3   :  { %1074 = vrcp.f32 %v346_v40 }
 0x3ad   :  { %v1075_v41 = vpop.eup %1074 }
 0x3ae   :  { %v361_v49 = vsub.f32 1.0, %v1075_v41  ;;  %v367_v51 = vmul.f32 %v1075_v41, %v266_v31 }
 0x406   :  { %v352_v42 = vpop.permute.xlu1 %351 }
 0x407   :  { %v354_v43 = vmul.f32 %v1075_v41, %v352_v42 }
 0x409   :  { %356 = vrot.lane.b32.xlu0 %v354_v43, %s1136_s16 }
 0x47b   :  { %v357_v44 = vpop.permute.xlu0 %356 }
 0x47c   :  { %v359_v45 = vadd.f32 %v357_v44, %v134_v36  ;;  %v149_v44 = vadd.f32 %v1210_v8, %v148_v20 }
 0x47e   :  { %1076 = vtanh.f32 %v359_v45 }
 0x488   :  { %v1077_v48 = vpop.eup %1076 }
 0x489   :  { %363 = vrot.lane.b32.xlu1 %v1077_v48, %s1134_s2 }
 0x4fb   :  { %v364_v50 = vpop.permute.xlu1 %363 }
 0x4fc   :  { %v366_v52 = vmul.f32 %v364_v50, %v361_v49 }
 0x4fe   :  { %v368_v53 = vadd.f32 %v367_v51, %v366_v52 }
 0x500   :  { %370 = vrot.lane.b32.xlu0 %v368_v53, %s1134_s2 }
 0x572   :  { %v371_v56 = vpop.permute.xlu0 %370 }
 0x573   :  { %998 = vmatmul.mubr.msk.f32.vlgmr.msra.gmra.mrb[4].mxu1 %vm159_vm5, %v371_v56 }
 0x574   :  { %1047 = vmatpush3.bf16.msk.msra.mxu1 %vm1203_vm3, %v1201_v6  ;;  %1011 = vmatprep.mubr.msk.f32.mxu1 %vm1132_vm4, %v1133_v9 }
 0x575   :  { %1052 = vmatprep.subr.bf16.mxu1 %v1130_v5 }
 0x646   :  { %v440_v57 = vpop.f32.mrb[4].mxu1 }
 0x647   :  { %v451_v58 = vadd.f32 %v440_v57, %v1233_v12  ;;  %v999_v59 = vpop.f32.mrb[5].mxu1  ;;  %v444_v61 = vadd.f32 %v440_v57, %v139_v60 }
 0x649   :  { %453 = vrot.lane.b32.xlu1 %v451_v58, %s1135_s3  ;;  %v926_v62 = vmul.f32 -1.442695, %v444_v61 }
 0x64b   :  { %1078 = vpow2.f32 %v926_v62 }
 0x655   :  { %v1079_v63 = vpop.eup %1078 }
 0x656   :  { %v448_v0 = vadd.f32 1.0, %v1079_v63 }
 0x658   :  { %1080 = vrcp.f32 %v448_v0  ;;  %v154_v0 = vadd.f32 %v1285_v19, %v1210_v8  ;;  %v778_v8 = vld [vmem:[%s1351_s4 + $0x8] sm:$0x3] }
 0x662   :  { %v1081_v1 = vpop.eup %1080 }
 0x663   :  { %v463_v14 = vsub.f32 1.0, %v1081_v1  ;;  %v469_v16 = vmul.f32 %v1081_v1, %v368_v53 }
 0x6bb   :  { %v454_v2 = vpop.permute.xlu1 %453 }
 0x6bc   :  { %v456_v3 = vmul.f32 %v1081_v1, %v454_v2 }
 0x6be   :  { %458 = vrot.lane.b32.xlu0 %v456_v3, %s1136_s16 }
 0x730   :  { %v459_v4 = vpop.permute.xlu0 %458 }
 0x731   :  { %v461_v5 = vadd.f32 %v459_v4, %v139_v60 }
 0x733   :  { %1082 = vtanh.f32 %v461_v5 }
 0x73d   :  { %v1083_v13 = vpop.eup %1082 }
 0x73e   :  { %465 = vrot.lane.b32.xlu1 %v1083_v13, %s1134_s2 }
 0x7b0   :  { %v466_v15 = vpop.permute.xlu1 %465 }
 0x7b1   :  { %v468_v17 = vmul.f32 %v466_v15, %v463_v14 }
 0x7b3   :  { %v470_v18 = vadd.f32 %v469_v16, %v468_v17  ;;  %v1137_v17 = vmov 0  }
 0x7b4   :  { %1065 = vset.pattern.permute.xlu0 %v1137_v17 }
 0x7b5   :  { %472 = vrot.lane.b32.xlu0 %v470_v18, %s1134_s2 }
 0x827   :  { %v473_v21 = vpop.permute.xlu0 %472 }
 0x828   :  { %1005 = vmatmul.mubr.msk.f32.vlgmr.msra.gmra.mrb[6].mxu0 %vm159_vm5, %v473_v21 }
 0x829   :  { %1051 = vmatpush3.bf16.msk.msra.mxu0 %vm1203_vm3, %v1201_v6  ;;  %1018 = vmatprep.mubr.msk.f32.mxu0 %vm1132_vm4, %v1133_v9 }
 0x8fb   :  { %v542_v22 = vpop.f32.mrb[6].mxu0 }
 0x8fc   :  { %v553_v23 = vadd.f32 %v542_v22, %v1233_v12  ;;  %v1006_v24 = vpop.f32.mrb[7].mxu0  ;;  %v546_v26 = vadd.f32 %v542_v22, %v144_v25 }
 0x8fe   :  { %555 = vrot.lane.b32.xlu1 %v553_v23, %s1135_s3  ;;  %v929_v27 = vmul.f32 -1.442695, %v546_v26  ;;  %v880_v23 = vld [vmem:[%s1353_s6] sm:$0xff] }
 0x900   :  { %1084 = vpow2.f32 %v929_v27  ;;  %v936_v27 = vld [vmem:[%s1352_s5] ss:$0 sm:$0xff]  ;;  %s1138_s5 = smov [#allocation2]  }
 0x901   :  { %s900_s6 = sshll.u32 %s1138_s5, 4  ;;  %s901_s6 = int_to_ptr.vmem [resolvable:$true] %s900_s6 }
 0x902   :  { %s1106_s9 = scalar_lea.vmem %s901_s6, 128  ;;  %p1111_p1 = scmp.lt.s32.totalorder %s901_s6, %s901_s6 }
 0x903   :  { %p1107_p0 = scmp.ne.s32.totalorder %s901_s6, %s1106_s9  ;;  %p1112_p2 = scmp.lt.s32.totalorder %s1106_s9, %s1106_s9 }
 0x905   :  { %p1113_p3 = por %p1112_p2, %p1111_p1 }
 0x907   :  { %p1114_p4 = pnand %p1113_p3, %p1107_p0 }
 0x90a   :  { %v1085_v28 = vpop.eup %1084 }
 0x90b   :  { %v550_v29 = vadd.f32 1.0, %v1085_v28 }
 0x90d   :  { %1086 = vrcp.f32 %v550_v29 }
 0x917   :  { %v1087_v30 = vpop.eup %1086 }
 0x918   :  { %v565_v35 = vsub.f32 1.0, %v1087_v30  ;;  %v571_v37 = vmul.f32 %v1087_v30, %v470_v18 }
 0x970   :  { %v556_v31 = vpop.permute.xlu1 %555 }
 0x971   :  { %v558_v6 = vmul.f32 %v1087_v30, %v556_v31 }
 0x973   :  { %560 = vrot.lane.b32.xlu0 %v558_v6, %s1136_s16 }
 0x9e5   :  { %v561_v32 = vpop.permute.xlu0 %560 }
 0x9e6   :  { %v563_v33 = vadd.f32 %v561_v32, %v144_v25  ;;  %v879_v25 = vand.u32 127, %v878_v7 }
 0x9e8   :  { %1088 = vtanh.f32 %v563_v33 }
 0x9f2   :  { %v1089_v34 = vpop.eup %1088 }
 0x9f3   :  { %567 = vrot.lane.b32.xlu1 %v1089_v34, %s1134_s2 }
 0xa65   :  { %v568_v36 = vpop.permute.xlu1 %567 }
 0xa66   :  { %v570_v38 = vmul.f32 %v568_v36, %v565_v35 }
 0xa68   :  { %v572_v39 = vadd.f32 %v571_v37, %v570_v38 }
 0xa6a   :  { %574 = vrot.lane.b32.xlu0 %v572_v39, %s1134_s2 }
 0xadc   :  { %v575_v40 = vpop.permute.xlu0 %574 }
 0xadd   :  { %1012 = vmatmul.mubr.msk.f32.vlgmr.msra.gmra.mrb[6].mxu1 %vm159_vm5, %v575_v40 }
 0xade   :  { %1025 = vmatprep.mubr.msk.f32.mxu1 %vm1132_vm4, %v1133_v9 }
 0xbb0   :  { %v644_v41 = vpop.f32.mrb[6].mxu1 }
 0xbb1   :  { %v655_v42 = vadd.f32 %v644_v41, %v1233_v12  ;;  %v1013_v43 = vpop.f32.mrb[7].mxu1  ;;  %v648_v45 = vadd.f32 %v644_v41, %v149_v44 }
 0xbb3   :  { %657 = vrot.lane.b32.xlu1 %v655_v42, %s1135_s3  ;;  %v932_v46 = vmul.f32 -1.442695, %v648_v45 }
 0xbb5   :  { %1090 = vpow2.f32 %v932_v46 }
 0xbbf   :  { %v1091_v47 = vpop.eup %1090 }
 0xbc0   :  { %v652_v48 = vadd.f32 1.0, %v1091_v47 }
 0xbc2   :  { %1092 = vrcp.f32 %v652_v48 }
 0xbcc   :  { %v1093_v49 = vpop.eup %1092 }
 0xbcd   :  { %v667_v55 = vsub.f32 1.0, %v1093_v49  ;;  %v673_v57 = vmul.f32 %v1093_v49, %v572_v39 }
 0xc25   :  { %v658_v50 = vpop.permute.xlu1 %657 }
 0xc26   :  { %v660_v51 = vmul.f32 %v1093_v49, %v658_v50 }
 0xc28   :  { %662 = vrot.lane.b32.xlu0 %v660_v51, %s1136_s16 }
 0xc9a   :  { %v663_v52 = vpop.permute.xlu0 %662 }
 0xc9b   :  { %v665_v53 = vadd.f32 %v663_v52, %v149_v44 }
 0xc9d   :  { %1094 = vtanh.f32 %v665_v53 }
 0xca7   :  { %v1095_v54 = vpop.eup %1094 }
 0xca8   :  { %669 = vrot.lane.b32.xlu1 %v1095_v54, %s1134_s2 }
 0xd1a   :  { %v670_v56 = vpop.permute.xlu1 %669 }
 0xd1b   :  { %v672_v58 = vmul.f32 %v670_v56, %v667_v55 }
 0xd1d   :  { %v674_v59 = vadd.f32 %v673_v57, %v672_v58 }
 0xd1f   :  { %676 = vrot.lane.b32.xlu0 %v674_v59, %s1134_s2 }
 0xd91   :  { %v677_v60 = vpop.permute.xlu0 %676 }
 0xd92   :  { %1019 = vmatmul.mubr.msk.f32.vlgmr.msra.gmra.mrb[8].mxu0 %vm159_vm5, %v677_v60 }
 0xe65   :  { %v746_v61 = vpop.f32.mrb[8].mxu0 }
 0xe66   :  { %v757_v62 = vadd.f32 %v746_v61, %v1233_v12  ;;  %v1020_v63 = vpop.f32.mrb[9].mxu0  ;;  %v750_v1 = vadd.f32 %v746_v61, %v154_v0  ;;  %v777_v12 = vld [vmem:[%s1351_s4] sm:$0xff] }
 0xe67   :  { %v1053_v15 = vpack.c.bf16 %v778_v8, %v777_v12 }
 0xe68   :  { %759 = vrot.lane.b32.xlu1 %v757_v62, %s1135_s3  ;;  %v935_v2 = vmul.f32 -1.442695, %v750_v1 }
 0xe69   :  { %1055 = vmatpush3.bf16.msk.msra.mxu1 %vm1203_vm3, %v1053_v15 }
 0xe6a   :  { %1096 = vpow2.f32 %v935_v2 }
 0xe74   :  { %v1097_v3 = vpop.eup %1096 }
 0xe75   :  { %v754_v4 = vadd.f32 1.0, %v1097_v3 }
 0xe77   :  { %1098 = vrcp.f32 %v754_v4 }
 0xe81   :  { %v1099_v5 = vpop.eup %1098 }
 0xe82   :  { %v769_v18 = vsub.f32 1.0, %v1099_v5  ;;  %v775_v20 = vmul.f32 %v1099_v5, %v674_v59 }
 0xeda   :  { %v760_v10 = vpop.permute.xlu1 %759 }
 0xedb   :  { %v762_v11 = vmul.f32 %v1099_v5, %v760_v10 }
 0xedd   :  { %764 = vrot.lane.b32.xlu0 %v762_v11, %s1136_s16 }
 0xf4f   :  { %v765_v13 = vpop.permute.xlu0 %764 }
 0xf50   :  { %v767_v14 = vadd.f32 %v765_v13, %v154_v0 }
 0xf52   :  { %1100 = vtanh.f32 %v767_v14 }
 0xf5c   :  { %v1101_v16 = vpop.eup %1100 }
 0xf5d   :  { %771 = vrot.lane.b32.xlu1 %v1101_v16, %s1134_s2 }
 0xfcf   :  { %v772_v19 = vpop.permute.xlu1 %771 }
 0xfd0   :  { %v774_v21 = vmul.f32 %v772_v19, %v769_v18 }
 0xfd2   :  { %v776_v22 = vadd.f32 %v775_v20, %v774_v21 }
 0xfd4   :  { %787 = vrot.lane.b32.xlu0 %v776_v22, %s1134_s2 }
 0xfd8   :  { %882 = vperm.xlu0 %1065, %v880_v23  }
0x1046   :  { %v788_v24 = vpop.permute.xlu0 %787 }
0x1047   :  { %1026 = vmatmul.mubr.msk.f32.vlgmr.msra.gmra.mrb[8].mxu1 %vm159_vm5, %v788_v24 }
0x1057   :  { %v883_v26 = vpop.permute.xlu0 %882 }
0x1058   :  { %vm884_vm6 = vcmp.eq.s32.totalorder %v879_v25, %v883_v26 }
0x1059   :  { %v939_v28 = vsel %vm884_vm6, 1.0, %v1133_v9 }
0x111a   :  { %v860_v29 = vpop.f32.mrb[8].mxu1 }
0x111b   :  { %v861_v30 = vadd.f32 %v936_v27, %v860_v29  ;;  %v1027_v31 = vpop.f32.mrb[9].mxu1 }
0x111d   :  { %v866_v6 = vsel %vm864_vm7, %v861_v30, -inf  ;;  %865 = vst.msk [vmem:[#allocation2] sm:$0xff] %vm864_vm7, %v861_v30  ;;  %v887_v32 = vmul.f32 %v939_v28, %v861_v30 }
0x111e   :  { %867 = vmax.xlane.f32.xlu1 %v866_v6 }
0x111f   :  { %v888_v33 = vsel %vm864_vm7, %v887_v32, 0.0 }
0x1122   :  { %889 = vadd.xlane.f32.xlu1 %v888_v33 }
0x11ab   :  { %v868_v34 = vpop.xlane.xlu1 %867 }
0x11ac   :  { %v869_v35 = vsub.f32 %v861_v30, %v868_v34 }
0x11ae   :  { %v870_v36 = vmul.f32 1.442695, %v869_v35 }
0x11b0   :  { %1102 = vpow2.f32 %v870_v36 }
0x11ba   :  { %v1103_v37 = vpop.eup %1102 }
0x11bb   :  { %v872_v38 = vsel %vm864_vm7, %v1103_v37, 0.0 }
0x11bc   :  { %873 = vadd.xlane.f32.xlu0 %v872_v38 }
0x11bd   :  { %1117 = shalt.err (!%p1114_p4)
}
0x11be   :  { %s1118_s12 = scalar_lea.hbm %s1354_s7, 128 }
0x11bf   :  { %p1119_p5 = scmp.ne.s32.totalorder %s1354_s7, %s1118_s12  ;;  %p1122_p6 = scmp.lt.u32.totalorder %s1118_s12, %s1354_s7 }
0x11c1   :  { %p1124_p7 = pnand %p1122_p6, %p1119_p5 }
0x11c3   :  { %1127 = shalt.err (!%p1124_p7)
}
0x11c4   :  { %903 = dma.vmem_to_hbm [thread:$0]  %s901_s6, 128, %s1354_s7, [#allocation3]   ;;  %v890_v42 = vpop.xlane.xlu1 %889  ;;  %vm892_vm8 = vcmask 7168  }
0x1249   :  { %v874_v9 = vpop.xlane.xlu0 %873 }
0x124a   :  { %1104 = vlog2.f32 %v874_v9 }
0x1254   :  { %v1105_v39 = vpop.eup %1104 }
0x1255   :  { %v876_v40 = vmul.f32 0.6931472, %v1105_v39 }
0x1257   :  { %v877_v41 = vadd.f32 %v876_v40, %v868_v34 }
0x1259   :  { %v891_v43 = vsub.f32 %v877_v41, %v890_v42 }
0x125b   :  { %893 = vst.msk [vmem:[%s1355_s8] sm:$0xff] %vm892_vm8, %v891_v43 }
0x125c   :  { %1128 = dma.done.wait [#allocation3], 128  }
0x125d   :  { %1129 = vsyncadd [#allocation3], 4294967168 }
0x125e   :  { %911 = vsyncpa [#allocation3], 1 }

</bundles_post_ra>
